<compile_context>
chip_gen: v7x
topology: tpu7x:2x2x1
jax: 0.10.0
libtpu: 0.0.40
codegen_flags: <defaults>
</compile_context>

<pallas_src>
import math

import jax
import jax.numpy as jnp
from jax.experimental import pallas as pl
from jax.experimental.pallas import tpu as pltpu

LANE = 128     # lane width (last-dim tiling unit)
SUBLANE = 8    # sublane width (second-to-last-dim tiling unit)


def _round_up(n, m):
    return ((n + m - 1) // m) * m


def actor_kernel(x_ref, w1_ref, b1_ref, w2_ref, b2_ref, w3_ref, b3_ref, out_ref):
    """Fused MLP tile: 3x (bf16 matmul, f32 acc + bias), 2x ReLU, f32 softmax.

    x / weight refs hold bf16, biases are f32, output action axis is already
    lane-padded to a multiple of 128 by the wrapper (padded bias columns carry
    -1e30 so they vanish under softmax).
    """
    x = x_ref[...]  # bf16 [TB, Dp]

    # Layer 1: Linear(input_dims, fc1) + ReLU   (f32 accumulation on the MXU)
    h1 = jnp.dot(x, w1_ref[...], preferred_element_type=jnp.float32) + b1_ref[...]
    h1 = jnp.maximum(h1, 0.0)

    # Layer 2: Linear(fc1, fc2) + ReLU
    h2 = jnp.dot(h1.astype(jnp.bfloat16), w2_ref[...],
                 preferred_element_type=jnp.float32) + b2_ref[...]
    h2 = jnp.maximum(h2, 0.0)

    # Layer 3: Linear(fc2, n_actions_padded)
    logits = jnp.dot(h2.astype(jnp.bfloat16), w3_ref[...],
                     preferred_element_type=jnp.float32) + b3_ref[...]

    # Softmax(dim=-1), numerically stable, f32.  Exact divide (denom is only
    # [TB,1], cost is negligible) so downstream log_prob / PPO ratios see
    # properly normalized probabilities.
    m = jnp.max(logits, axis=-1, keepdims=True)
    e = jnp.exp(logits - m)
    denom = jnp.sum(e, axis=-1, keepdims=True)
    out_ref[...] = (e / denom).astype(out_ref.dtype)


def prepare_params(params):
    """One-time parameter prep, hoisted out of the per-call forward path.

    * W1 rows zero-padded so the contraction dim is a multiple of 128.
    * W3 cols zero-padded / b3 padded with -1e30 so the action axis is a
      multiple of 128 (lane-dense output stores); padded logits underflow to 0
      under softmax (safe because b3 stays f32 and padded W3 columns are zero).
    * Weight matrices cast to bf16 once; biases stay f32.
    """
    w1, b1, w2, b2, w3, b3 = params
    d, fc1 = w1.shape
    fc2, n_actions = w3.shape
    d_pad = _round_up(d, LANE)
    n_pad = _round_up(n_actions, LANE)
    if d_pad != d:
        w1 = jnp.pad(w1, ((0, d_pad - d), (0, 0)))
    if n_pad != n_actions:
        w3 = jnp.pad(w3, ((0, 0), (0, n_pad - n_actions)))
        b3 = jnp.concatenate(
            [b3, jnp.full((1, n_pad - n_actions), -1e30, b3.dtype)], axis=1)
    return {
        "w1": w1.astype(jnp.bfloat16), "b1": b1.astype(jnp.float32),
        "w2": w2.astype(jnp.bfloat16), "b2": b2.astype(jnp.float32),
        "w3": w3.astype(jnp.bfloat16), "b3": b3.astype(jnp.float32),
        "d": d, "d_pad": d_pad, "fc1": fc1, "fc2": fc2,
        "n_actions": n_actions, "n_pad": n_pad,
    }


def _choose_tb(B, block_b):
    """Batch tile: fewest, balanced grid steps.

    * B <= 128: a single small tile (nothing to split across cores).
    * otherwise: >=2 balanced tiles so v7x's two TCs both get real work, capped
      near block_b rows.  Prefer 128-row multiples (clean v5e MXU mapping) when
      that adds only a small number of padded rows; otherwise 8-row multiples.
    """
    if B <= 128:
        return _round_up(B, SUBLANE)
    n_steps = max(2, pl.cdiv(B, block_b))
    per = pl.cdiv(B, n_steps)
    tb8 = _round_up(per, SUBLANE)
    tb128 = _round_up(per, LANE)
    if tb128 * n_steps - B <= max(B // 8, SUBLANE):
        return tb128
    return tb8


def actor_forward(x, prep, *, block_b=2048, out_dtype=jnp.bfloat16):
    """Run the batched actor MLP kernel. Returns softmax probabilities [B, n_actions].

    `prep` must come from prepare_params().  Pass out_dtype=jnp.float32 if full
    f32 probabilities are required downstream (default bf16 halves the dominant
    output writeback traffic).
    """
    B, D = x.shape
    d_pad, n_pad = prep["d_pad"], prep["n_pad"]
    fc1, fc2, n_actions = prep["fc1"], prep["fc2"], prep["n_actions"]
    assert D == prep["d"], "input feature dim does not match prepared params"

    tb = _choose_tb(B, block_b)
    b_pad = _round_up(B, tb)

    # Activations to bf16 for the MXU; zero-pad batch rows and contraction dim.
    x_bf = x.astype(jnp.bfloat16)
    if b_pad != B or d_pad != D:
        x_bf = jnp.pad(x_bf, ((0, b_pad - B), (0, d_pad - D)))

    grid = (b_pad // tb,)
    out = pl.pallas_call(
        actor_kernel,
        out_shape=jax.ShapeDtypeStruct((b_pad, n_pad), out_dtype),
        grid=grid,
        in_specs=[
            pl.BlockSpec((tb, d_pad), lambda i: (i, 0)),    # x: tiled over batch
            pl.BlockSpec((d_pad, fc1), lambda i: (0, 0)),   # weights/biases: resident
            pl.BlockSpec((1, fc1), lambda i: (0, 0)),
            pl.BlockSpec((fc1, fc2), lambda i: (0, 0)),
            pl.BlockSpec((1, fc2), lambda i: (0, 0)),
            pl.BlockSpec((fc2, n_pad), lambda i: (0, 0)),
            pl.BlockSpec((1, n_pad), lambda i: (0, 0)),
        ],
        out_specs=pl.BlockSpec((tb, n_pad), lambda i: (i, 0)),
        compiler_params=pltpu.CompilerParams(
            dimension_semantics=("parallel",)),             # v7x: 2 TCs split batch
    )(x_bf, prep["w1"], prep["b1"], prep["w2"], prep["b2"], prep["w3"], prep["b3"])

    return out[:B, :n_actions]


def init_linear(key, fan_in, fan_out):
    """Deterministic init mimicking torch.nn.Linear default (uniform +/- 1/sqrt(fan_in)).

    Weight returned as [in, out] (already transposed for x @ W); bias as [1, out].
    """
    kw, kb = jax.random.split(key)
    bound = 1.0 / math.sqrt(fan_in)
    w = jax.random.uniform(kw, (fan_in, fan_out), jnp.float32, -bound, bound)
    b = jax.random.uniform(kb, (1, fan_out), jnp.float32, -bound, bound)
    return w, b


def ref_forward(x, params):
    """Pure-JAX reference with matching bf16-matmul / f32-accumulate numerics."""
    w1, b1, w2, b2, w3, b3 = params
    bf = jnp.bfloat16
    h1 = jnp.maximum(
        jnp.dot(x.astype(bf), w1.astype(bf), preferred_element_type=jnp.float32) + b1, 0.0)
    h2 = jnp.maximum(
        jnp.dot(h1.astype(bf), w2.astype(bf), preferred_element_type=jnp.float32) + b2, 0.0)
    logits = jnp.dot(h2.astype(bf), w3.astype(bf),
                     preferred_element_type=jnp.float32) + b3
    return jax.nn.softmax(logits, axis=-1)


if __name__ == "__main__":
    # Small shapes consistent with the module's forward:
    #   state: [batch, input_dims], fc1 = fc2 = 256, n_actions small.
    batch = 8
    input_dims = 64
    fc1_dims = 256
    fc2_dims = 256
    n_actions = 4

    key = jax.random.PRNGKey(0)
    k_x, k1, k2, k3, k_roll = jax.random.split(key, 5)

    x = jax.random.normal(k_x, (batch, input_dims), jnp.float32)
    w1, b1 = init_linear(k1, input_dims, fc1_dims)
    w2, b2 = init_linear(k2, fc1_dims, fc2_dims)
    w3, b3 = init_linear(k3, fc2_dims, n_actions)
    params = (w1, b1, w2, b2, w3, b3)

    # One-time pad + bf16 cast of the weights (hoisted out of the forward path).
    prep = jax.tree_util.tree_map(jax.block_until_ready, prepare_params(params))

    # Single-step (tiny batch) path: one grid step, batch padded to 8 sublanes.
    probs = jax.block_until_ready(actor_forward(x, prep))
    ref = ref_forward(x, params)
    probs_f32 = probs.astype(jnp.float32)
    assert probs.shape == (batch, n_actions)
    assert jnp.allclose(jnp.sum(probs_f32, axis=-1), 1.0, atol=5e-3)
    assert jnp.allclose(probs_f32, ref, atol=5e-3, rtol=5e-3)

    # Rollout-style batched path: 2 balanced grid steps (B=400 -> tb=200, no
    # padded rows), "parallel" so v7x splits them across its two TensorCores.
    rollout_b = 400
    x_roll = jax.random.normal(k_roll, (rollout_b, input_dims), jnp.float32)
    probs_roll = jax.block_until_ready(actor_forward(x_roll, prep))
    ref_roll = ref_forward(x_roll, params)
    probs_roll_f32 = probs_roll.astype(jnp.float32)
    assert probs_roll.shape == (rollout_b, n_actions)
    assert jnp.allclose(jnp.sum(probs_roll_f32, axis=-1), 1.0, atol=5e-3)
    assert jnp.allclose(probs_roll_f32, ref_roll, atol=5e-3, rtol=5e-3)

    # f32-output path (for callers that want exact-precision probs for log_prob).
    probs_f32_path = jax.block_until_ready(
        actor_forward(x, prep, out_dtype=jnp.float32))
    assert jnp.allclose(probs_f32_path, ref, atol=5e-3, rtol=5e-3)

    # TODO(synk): torch.distributions.Categorical (sampling / log_prob), the Adam
    # optimizer and checkpoint I/O are host-side glue, not kernel compute; only the
    # probability tensor is produced here.  The critic head (256->1 matmul) and an
    # in-kernel Categorical sample via pltpu.prng_seed/prng_random_bits could be
    # fused into this same pallas_call to shrink the output to [tb, 1-2] and save a
    # second launch.
    print("KERNEL_OK")
</pallas_src>

<mosaic_0001>
module attributes {stable_mosaic.version = 11 : i64} {
  func.func @actor_kernel(%arg0: i32, %arg1: memref<8x128xbf16, #tpu.memory_space<vmem>>, %arg2: memref<128x256xbf16, #tpu.memory_space<vmem>>, %arg3: memref<1x256xf32, #tpu.memory_space<vmem>>, %arg4: memref<256x256xbf16, #tpu.memory_space<vmem>>, %arg5: memref<1x256xf32, #tpu.memory_space<vmem>>, %arg6: memref<256x128xbf16, #tpu.memory_space<vmem>>, %arg7: memref<1x128xf32, #tpu.memory_space<vmem>>, %arg8: memref<8x128xbf16, #tpu.memory_space<vmem>>) attributes {dimension_semantics = [#tpu.dimension_semantics<parallel>], iteration_bounds = array<i64: 1>, scalar_prefetch = 0 : i64, scratch_operands = 0 : i64, tpu.core_type = #tpu.core_type<tc>, window_params = [{transform_indices = @transform_0, window_bounds = array<i64: 8, 128>}, {pipeline_mode = #tpu.pipeline_mode<synchronous>, transform_indices = @transform_1, window_bounds = array<i64: 128, 256>}, {pipeline_mode = #tpu.pipeline_mode<synchronous>, transform_indices = @transform_2, window_bounds = array<i64: 1, 256>}, {pipeline_mode = #tpu.pipeline_mode<synchronous>, transform_indices = @transform_3, window_bounds = array<i64: 256, 256>}, {pipeline_mode = #tpu.pipeline_mode<synchronous>, transform_indices = @transform_4, window_bounds = array<i64: 1, 256>}, {pipeline_mode = #tpu.pipeline_mode<synchronous>, transform_indices = @transform_5, window_bounds = array<i64: 256, 128>}, {pipeline_mode = #tpu.pipeline_mode<synchronous>, transform_indices = @transform_6, window_bounds = array<i64: 1, 128>}, {transform_indices = @transform_7, window_bounds = array<i64: 8, 128>}]} {
    %c0 = arith.constant 0 : index
    %c0_0 = arith.constant 0 : index
    %0 = vector.load %arg1[%c0, %c0_0] : memref<8x128xbf16, #tpu.memory_space<vmem>>, vector<8x128xbf16>
    %c0_1 = arith.constant 0 : index
    %c0_2 = arith.constant 0 : index
    %1 = vector.load %arg2[%c0_1, %c0_2] : memref<128x256xbf16, #tpu.memory_space<vmem>>, vector<128x256xbf16>
    %cst = arith.constant dense<0.000000e+00> : vector<8x256xf32>
    %2 = tpu.matmul %0, %1, %cst {dimension_numbers = #tpu.dot_dimension_numbers<[1], [0], [0], [1], [0, 0, 1, 1], [], []>} : vector<8x128xbf16>, vector<128x256xbf16>, vector<8x256xf32> -> vector<8x256xf32>
    %c0_3 = arith.constant 0 : index
    %c0_4 = arith.constant 0 : index
    %3 = vector.load %arg3[%c0_3, %c0_4] : memref<1x256xf32, #tpu.memory_space<vmem>>, vector<1x256xf32>
    %4 = vector.broadcast %3 : vector<1x256xf32> to vector<8x256xf32>
    %5 = arith.addf %2, %4 : vector<8x256xf32>
    %cst_5 = arith.constant 0.000000e+00 : f32
    %6 = vector.broadcast %cst_5 : f32 to vector<8x256xf32>
    %7 = arith.maximumf %5, %6 : vector<8x256xf32>
    %8 = arith.truncf %7 : vector<8x256xf32> to vector<8x256xbf16>
    %c0_6 = arith.constant 0 : index
    %c0_7 = arith.constant 0 : index
    %9 = vector.load %arg4[%c0_6, %c0_7] : memref<256x256xbf16, #tpu.memory_space<vmem>>, vector<256x256xbf16>
    %cst_8 = arith.constant dense<0.000000e+00> : vector<8x256xf32>
    %10 = tpu.matmul %8, %9, %cst_8 {dimension_numbers = #tpu.dot_dimension_numbers<[1], [0], [0], [1], [0, 0, 1, 1], [], []>} : vector<8x256xbf16>, vector<256x256xbf16>, vector<8x256xf32> -> vector<8x256xf32>
    %c0_9 = arith.constant 0 : index
    %c0_10 = arith.constant 0 : index
    %11 = vector.load %arg5[%c0_9, %c0_10] : memref<1x256xf32, #tpu.memory_space<vmem>>, vector<1x256xf32>
    %12 = vector.broadcast %11 : vector<1x256xf32> to vector<8x256xf32>
    %13 = arith.addf %10, %12 : vector<8x256xf32>
    %cst_11 = arith.constant 0.000000e+00 : f32
    %14 = vector.broadcast %cst_11 : f32 to vector<8x256xf32>
    %15 = arith.maximumf %13, %14 : vector<8x256xf32>
    %16 = arith.truncf %15 : vector<8x256xf32> to vector<8x256xbf16>
    %c0_12 = arith.constant 0 : index
    %c0_13 = arith.constant 0 : index
    %17 = vector.load %arg6[%c0_12, %c0_13] : memref<256x128xbf16, #tpu.memory_space<vmem>>, vector<256x128xbf16>
    %cst_14 = arith.constant dense<0.000000e+00> : vector<8x128xf32>
    %18 = tpu.matmul %16, %17, %cst_14 {dimension_numbers = #tpu.dot_dimension_numbers<[1], [0], [0], [1], [0, 0, 1, 1], [], []>} : vector<8x256xbf16>, vector<256x128xbf16>, vector<8x128xf32> -> vector<8x128xf32>
    %c0_15 = arith.constant 0 : index
    %c0_16 = arith.constant 0 : index
    %19 = vector.load %arg7[%c0_15, %c0_16] : memref<1x128xf32, #tpu.memory_space<vmem>>, vector<1x128xf32>
    %20 = vector.broadcast %19 : vector<1x128xf32> to vector<8x128xf32>
    %21 = arith.addf %18, %20 : vector<8x128xf32>
    %cst_17 = arith.constant dense<0xFF800000> : vector<8xf32>
    %22 = vector.multi_reduction <maximumf>, %21, %cst_17 [1] : vector<8x128xf32> to vector<8xf32>
    %23 = vector.shape_cast %22 : vector<8xf32> to vector<8x1xf32>
    %24 = vector.broadcast %23 : vector<8x1xf32> to vector<8x128xf32>
    %25 = arith.subf %21, %24 : vector<8x128xf32>
    %26 = math.exp %25 : vector<8x128xf32>
    %cst_18 = arith.constant dense<0.000000e+00> : vector<8xf32>
    %27 = vector.multi_reduction <add>, %26, %cst_18 [1] : vector<8x128xf32> to vector<8xf32>
    %28 = vector.shape_cast %27 : vector<8xf32> to vector<8x1xf32>
    %29 = vector.broadcast %28 : vector<8x1xf32> to vector<8x128xf32>
    %30 = arith.divf %26, %29 : vector<8x128xf32>
    %31 = arith.truncf %30 : vector<8x128xf32> to vector<8x128xbf16>
    %c0_19 = arith.constant 0 : index
    %c0_20 = arith.constant 0 : index
    %32 = vector.load %arg8[%c0_19, %c0_20] : memref<8x128xbf16, #tpu.memory_space<vmem>>, vector<8x128xbf16>
    tpu.vector_store %arg8[%c0_19, %c0_20], %31 {strides = array<i32>} : memref<8x128xbf16, #tpu.memory_space<vmem>>, vector<8x128xbf16>,
    return
  }
  func.func @transform_0(%arg0: i32) -> (i32, i32) {
    %c0_i32 = arith.constant 0 : i32
    %c0_i32_0 = arith.constant 0 : i32
    return %arg0, %c0_i32 : i32, i32
  }
  func.func @transform_1(%arg0: i32) -> (i32, i32) {
    %c0_i32 = arith.constant 0 : i32
    %c0_i32_0 = arith.constant 0 : i32
    %c0_i32_1 = arith.constant 0 : i32
    return %c0_i32, %c0_i32_0 : i32, i32
  }
  func.func @transform_2(%arg0: i32) -> (i32, i32) {
    %c0_i32 = arith.constant 0 : i32
    %c0_i32_0 = arith.constant 0 : i32
    %c0_i32_1 = arith.constant 0 : i32
    return %c0_i32, %c0_i32_0 : i32, i32
  }
  func.func @transform_3(%arg0: i32) -> (i32, i32) {
    %c0_i32 = arith.constant 0 : i32
    %c0_i32_0 = arith.constant 0 : i32
    %c0_i32_1 = arith.constant 0 : i32
    return %c0_i32, %c0_i32_0 : i32, i32
  }
  func.func @transform_4(%arg0: i32) -> (i32, i32) {
    %c0_i32 = arith.constant 0 : i32
    %c0_i32_0 = arith.constant 0 : i32
    %c0_i32_1 = arith.constant 0 : i32
    return %c0_i32, %c0_i32_0 : i32, i32
  }
  func.func @transform_5(%arg0: i32) -> (i32, i32) {
    %c0_i32 = arith.constant 0 : i32
    %c0_i32_0 = arith.constant 0 : i32
    %c0_i32_1 = arith.constant 0 : i32
    return %c0_i32, %c0_i32_0 : i32, i32
  }
  func.func @transform_6(%arg0: i32) -> (i32, i32) {
    %c0_i32 = arith.constant 0 : i32
    %c0_i32_0 = arith.constant 0 : i32
    %c0_i32_1 = arith.constant 0 : i32
    return %c0_i32, %c0_i32_0 : i32, i32
  }
  func.func @transform_7(%arg0: i32) -> (i32, i32) {
    %c0_i32 = arith.constant 0 : i32
    %c0_i32_0 = arith.constant 0 : i32
    return %arg0, %c0_i32 : i32, i32
  }
}

</mosaic_0001>

<bundles_post_ra>
// kernel: tpu_custom_call.1
= control target key start
LH: loop header
LB: loop body
LE: loop exit
PB: predicated region body
PF: predicated region fallthrough
CT: control target
= control target key end

     0   :  { %12 = vsyncpa [#allocation3], 0  ;;  %s1119_s0 = inlined_call_operand.hbm [shape: bf16[8,128], index: 0, kind: input, shape index: {}]   ;;  %s1120_s1 = inlined_call_operand.hbm [shape: bf16[128,256], index: 1, kind: input, shape index: {}]   ;;  %s1121_s2 = inlined_call_operand.vmem [shape: f32[1,256], index: 2, kind: input, shape index: {}]   ;;  %s1122_s3 = inlined_call_operand.hbm [shape: bf16[256,256], index: 3, kind: input, shape index: {}]   ;;  %s1123_s4 = inlined_call_operand.vmem [shape: f32[1,256], index: 4, kind: input, shape index: {}]   ;;  %s1124_s5 = inlined_call_operand.hbm [shape: bf16[256,128], index: 5, kind: input, shape index: {}]   ;;  %s1125_s6 = inlined_call_operand.vmem [shape: f32[1,128], index: 6, kind: input, shape index: {}]   ;;  %s1126_s7 = inlined_call_operand.hbm [shape: bf16[8,128], index: 7, kind: output, shape index: {}]  }
   0x1   :  { %13 = vsyncpa [#allocation6], 0 }
   0x2   :  { %14 = vsyncpa [#allocation9], 0 }
   0x3   :  { %15 = vsyncpa [#allocation4], 0  ;;  %s994_s24 = smov [#allocation5]   ;;  %s876_s28 = scalar_lea.hbm %s1120_s1, 2048 }
   0x4   :  { %s31_s25 = sshll.u32 %s994_s24, 4  ;;  %p877_p0 = scmp.ne.s32.totalorder %s1120_s1, %s876_s28  ;;  %s32_s25 = int_to_ptr.vmem [resolvable:$true] %s31_s25 }
   0x5   :  { %p880_p1 = scmp.lt.u32.totalorder %s876_s28, %s1120_s1 }
   0x7   :  { %p882_p2 = pnand %p880_p1, %p877_p0 }
   0x9   :  { %885 = shalt.err (!%p882_p2)
}
   0xa   :  { %s886_s10 = scalar_lea.vmem %s32_s25, 2048  ;;  %p891_p4 = scmp.lt.s32.totalorder %s32_s25, %s32_s25 }
   0xb   :  { %p887_p3 = scmp.ne.s32.totalorder %s32_s25, %s886_s10  ;;  %p892_p5 = scmp.lt.s32.totalorder %s886_s10, %s886_s10 }
   0xd   :  { %p893_p6 = por %p892_p5, %p891_p4 }
   0xf   :  { %p894_p7 = pnand %p893_p6, %p887_p3 }
  0x11   :  { %897 = shalt.err (!%p894_p7)
}
  0x12   :  { %s995_s11 = smov 128   ;;  %s996_s12 = smov 8  }
  0x13   :  { %37 = dma.hbm_to_vmem [thread:$0]  %s1120_s1, 2048, %s32_s25, [#allocation6], %s995_s11, %s995_s11, %s996_s12  }
  0x14   :  { %s997_s15 = smov [#allocation2]   ;;  %s998_s17 = smov [#allocation7]  }
  0x15   :  { %s22_s16 = sshll.u32 %s997_s15, 4  ;;  %s45_s18 = sshll.u32 %s998_s17, 4  ;;  %s23_s16 = int_to_ptr.vmem [resolvable:$true] %s22_s16  ;;  %s46_s18 = int_to_ptr.vmem [resolvable:$true] %s45_s18 }
  0x16   :  { %s898_s21 = scalar_lea.hbm %s1119_s0, 64 }
  0x17   :  { %p899_p8 = scmp.ne.s32.totalorder %s1119_s0, %s898_s21  ;;  %p902_p9 = scmp.lt.u32.totalorder %s898_s21, %s1119_s0 }
  0x19   :  { %p904_p10 = pnand %p902_p9, %p899_p8 }
  0x1b   :  { %907 = shalt.err (!%p904_p10)
}
  0x1c   :  { %s908_s1 = scalar_lea.vmem %s23_s16, 64  ;;  %p913_p12 = scmp.lt.s32.totalorder %s23_s16, %s23_s16 }
  0x1d   :  { %p909_p11 = scmp.ne.s32.totalorder %s23_s16, %s908_s1  ;;  %p914_p13 = scmp.lt.s32.totalorder %s908_s1, %s908_s1 }
  0x1f   :  { %p915_p0 = por %p914_p13, %p913_p12 }
  0x21   :  { %p916_p1 = pnand %p915_p0, %p909_p11 }
  0x23   :  { %919 = shalt.err (!%p916_p1)
}
  0x24   :  { %25 = dma.hbm_to_vmem [thread:$0]  %s1119_s0, 64, %s23_s16, [#allocation3]  }
  0x25   :  { %s920_s30 = scalar_lea.hbm %s1122_s3, 4096 }
  0x26   :  { %p921_p2 = scmp.ne.s32.totalorder %s1122_s3, %s920_s30  ;;  %p924_p3 = scmp.lt.u32.totalorder %s920_s30, %s1122_s3 }
  0x28   :  { %p926_p4 = pnand %p924_p3, %p921_p2 }
  0x2a   :  { %929 = shalt.err (!%p926_p4)
}
  0x2b   :  { %s930_s14 = scalar_lea.vmem %s46_s18, 4096  ;;  %p935_p6 = scmp.lt.s32.totalorder %s46_s18, %s46_s18 }
  0x2c   :  { %p931_p5 = scmp.ne.s32.totalorder %s46_s18, %s930_s14  ;;  %p936_p7 = scmp.lt.s32.totalorder %s930_s14, %s930_s14 }
  0x2e   :  { %p937_p8 = por %p936_p7, %p935_p6 }
  0x30   :  { %p938_p9 = pnand %p937_p8, %p931_p5 }
  0x32   :  { %941 = shalt.err (!%p938_p9)
}
  0x33   :  { %51 = dma.hbm_to_vmem [thread:$0]  %s1122_s3, 4096, %s46_s18, [#allocation6], %s995_s11, %s995_s11, %s996_s12  }
  0x34   :  { %s999_s16 = smov [#allocation8]   ;;  %s942_s21 = scalar_lea.hbm %s1124_s5, 2048 }
  0x35   :  { %s59_s17 = sshll.u32 %s999_s16, 4  ;;  %p943_p10 = scmp.ne.s32.totalorder %s1124_s5, %s942_s21  ;;  %s60_s17 = int_to_ptr.vmem [resolvable:$true] %s59_s17 }
  0x36   :  { %p946_p11 = scmp.lt.u32.totalorder %s942_s21, %s1124_s5 }
  0x38   :  { %p948_p12 = pnand %p946_p11, %p943_p10 }
  0x3a   :  { %951 = shalt.err (!%p948_p12)
}
  0x3b   :  { %s952_s1 = scalar_lea.vmem %s60_s17, 2048  ;;  %p957_p0 = scmp.lt.s32.totalorder %s60_s17, %s60_s17 }
  0x3c   :  { %p953_p13 = scmp.ne.s32.totalorder %s60_s17, %s952_s1  ;;  %p958_p1 = scmp.lt.s32.totalorder %s952_s1, %s952_s1 }
  0x3e   :  { %p959_p2 = por %p958_p1, %p957_p0 }
  0x40   :  { %p960_p3 = pnand %p959_p2, %p953_p13 }
  0x42   :  { %963 = shalt.err (!%p960_p3)
}
  0x43   :  { %s1000_s3 = smov 64   ;;  %s1001_s11 = smov 4  }
  0x44   :  { %65 = dma.hbm_to_vmem [thread:$0]  %s1124_s5, 2048, %s60_s17, [#allocation9], %s1000_s3, %s1000_s3, %s1001_s11  }
  0x45   :  { %986 = dma.done.wait [#allocation3], 64  }
  0x46   :  { %987 = vsyncadd [#allocation3], 4294967232 }
  0x47   :  { %988 = dma.done.wait [#allocation6], 6144  }
  0x48   :  { %989 = vsyncadd [#allocation6], 4294961152 }
  0x49   :  { %990 = dma.done.wait [#allocation9], 2048  }
  0x4a   :  { %991 = vsyncadd [#allocation9], 4294965248  ;;  %v1002_v0 = vmov 0   ;;  %v784_v1 = vld [vmem:[#allocation5 + $0x4] ss:$8 sps:$4 sm:$0xff]   ;;  %v860_v54 = vld [vmem:[#allocation8 + $0x50] sm:$0xff]   ;;  %v100_v62 = vlaneseq }
  0x4b   :  { %222 = vmatprep.mubr.bf16.mxu0 %v1002_v0  ;;  %v786_v2 = vld [vmem:[#allocation5] ss:$8 sps:$4 sm:$0xff]   ;;  %190 = vmatprep.subr.bf16.mxu0 %v784_v1  ;;  %v787_v3 = vld [vmem:[#allocation5 + $0x14] ss:$8 sps:$4 sm:$0xff]   ;;  %v789_v4 = vld [vmem:[#allocation5 + $0x10] ss:$8 sps:$4 sm:$0xff]  }
  0x4c   :  { %191 = vmatpush1.bf16.msra.mxu0 %v786_v2  ;;  %v790_v5 = vld [vmem:[#allocation5 + $0x24] ss:$8 sps:$4 sm:$0xff]   ;;  %v792_v6 = vld [vmem:[#allocation5 + $0x20] ss:$8 sps:$4 sm:$0xff]   ;;  %v793_v7 = vld [vmem:[#allocation5 + $0x34] ss:$8 sps:$4 sm:$0xff]  }
  0x4d   :  { %192 = vmatprep.subr.bf16.mxu0 %v787_v3  ;;  %v795_v8 = vld [vmem:[#allocation5 + $0x30] ss:$8 sps:$4 sm:$0xff]   ;;  %v796_v9 = vld [vmem:[#allocation5 + $0x44] ss:$8 sps:$4 sm:$0xff]   ;;  %v810_v11 = vld [vmem:[#allocation7] ss:$8 sps:$4 sm:$0xff]  }
  0x4e   :  { %v808_v10 = vld [vmem:[#allocation7 + $0x4] ss:$8 sps:$4 sm:$0xff]   ;;  %v811_v12 = vld [vmem:[#allocation7 + $0x14] ss:$8 sps:$4 sm:$0xff]   ;;  %v798_v13 = vld [vmem:[#allocation5 + $0x40] ss:$8 sps:$4 sm:$0xff]  }
  0x4f   :  { %439 = vmatprep.subr.bf16.mxu1 %v808_v10  ;;  %v813_v14 = vld [vmem:[#allocation7 + $0x10] ss:$8 sps:$4 sm:$0xff]   ;;  %v814_v15 = vld [vmem:[#allocation7 + $0x24] ss:$8 sps:$4 sm:$0xff]   ;;  %v799_v16 = vld [vmem:[#allocation5 + $0x54] ss:$8 sps:$4 sm:$0xff]  }
  0x50   :  { %193 = vmatpush1.bf16.msra.mxu0 %v789_v4  ;;  %440 = vmatpush1.bf16.msra.mxu1 %v810_v11  ;;  %v801_v17 = vld [vmem:[#allocation5 + $0x50] ss:$8 sps:$4 sm:$0xff]   ;;  %v816_v18 = vld [vmem:[#allocation7 + $0x20] ss:$8 sps:$4 sm:$0xff]   ;;  %v817_v19 = vld [vmem:[#allocation7 + $0x34] ss:$8 sps:$4 sm:$0xff]  }
  0x51   :  { %194 = vmatprep.subr.bf16.mxu0 %v790_v5  ;;  %441 = vmatprep.subr.bf16.mxu1 %v811_v12  ;;  %v802_v20 = vld [vmem:[#allocation5 + $0x64] ss:$8 sps:$4 sm:$0xff]   ;;  %v804_v21 = vld [vmem:[#allocation5 + $0x60] ss:$8 sps:$4 sm:$0xff]   ;;  %v819_v22 = vld [vmem:[#allocation7 + $0x30] ss:$8 sps:$4 sm:$0xff]  }
  0x52   :  { %v820_v23 = vld [vmem:[#allocation7 + $0x44] ss:$8 sps:$4 sm:$0xff]   ;;  %v805_v24 = vld [vmem:[#allocation5 + $0x74] ss:$8 sps:$4 sm:$0xff]   ;;  %v807_v25 = vld [vmem:[#allocation5 + $0x70] ss:$8 sps:$4 sm:$0xff]  }
  0x53   :  { %v822_v26 = vld [vmem:[#allocation7 + $0x40] ss:$8 sps:$4 sm:$0xff]   ;;  %v823_v27 = vld [vmem:[#allocation7 + $0x54] ss:$8 sps:$4 sm:$0xff]   ;;  %v825_v29 = vld [vmem:[#allocation7 + $0x50] ss:$8 sps:$4 sm:$0xff]  }
  0x54   :  { %195 = vmatpush1.bf16.msra.mxu0 %v792_v6  ;;  %442 = vmatpush1.bf16.msra.mxu1 %v813_v14  ;;  %v81_v28 = vld [vmem:[#allocation2] sm:$0xf]  ;;  %v826_v30 = vld [vmem:[#allocation7 + $0x64] ss:$8 sps:$4 sm:$0xff]   ;;  %v828_v31 = vld [vmem:[#allocation7 + $0x60] ss:$8 sps:$4 sm:$0xff]  }
  0x55   :  { %196 = vmatprep.subr.bf16.mxu0 %v793_v7  ;;  %443 = vmatprep.subr.bf16.mxu1 %v814_v15  ;;  %v829_v32 = vld [vmem:[#allocation7 + $0x74] ss:$8 sps:$4 sm:$0xff]   ;;  %v831_v33 = vld [vmem:[#allocation7 + $0x70] ss:$8 sps:$4 sm:$0xff]   ;;  %v832_v34 = vld [vmem:[#allocation7 + $0x84] ss:$8 sps:$4 sm:$0xff]  }
  0x56   :  { %v834_v35 = vld [vmem:[#allocation7 + $0x80] ss:$8 sps:$4 sm:$0xff]   ;;  %v835_v36 = vld [vmem:[#allocation7 + $0x94] ss:$8 sps:$4 sm:$0xff]   ;;  %v837_v37 = vld [vmem:[#allocation7 + $0x90] ss:$8 sps:$4 sm:$0xff]  }
  0x57   :  { %v838_v38 = vld [vmem:[#allocation7 + $0xa4] ss:$8 sps:$4 sm:$0xff]   ;;  %v840_v39 = vld [vmem:[#allocation7 + $0xa0] ss:$8 sps:$4 sm:$0xff]   ;;  %v841_v40 = vld [vmem:[#allocation7 + $0xb4] ss:$8 sps:$4 sm:$0xff]  }
  0x58   :  { %197 = vmatpush1.bf16.msra.mxu0 %v795_v8  ;;  %444 = vmatpush1.bf16.msra.mxu1 %v816_v18  ;;  %v843_v41 = vld [vmem:[#allocation7 + $0xb0] ss:$8 sps:$4 sm:$0xff]   ;;  %v844_v42 = vld [vmem:[#allocation7 + $0xc4] ss:$8 sps:$4 sm:$0xff]   ;;  %v846_v43 = vld [vmem:[#allocation7 + $0xc0] ss:$8 sps:$4 sm:$0xff]  }
  0x59   :  { %198 = vmatprep.subr.bf16.mxu0 %v796_v9  ;;  %445 = vmatprep.subr.bf16.mxu1 %v817_v19  ;;  %v847_v44 = vld [vmem:[#allocation7 + $0xd4] ss:$8 sps:$4 sm:$0xff]   ;;  %v849_v45 = vld [vmem:[#allocation7 + $0xd0] ss:$8 sps:$4 sm:$0xff]   ;;  %v850_v46 = vld [vmem:[#allocation7 + $0xe4] ss:$8 sps:$4 sm:$0xff]  }
  0x5a   :  { %v852_v47 = vld [vmem:[#allocation7 + $0xe0] ss:$8 sps:$4 sm:$0xff]   ;;  %v853_v48 = vld [vmem:[#allocation7 + $0xf4] ss:$8 sps:$4 sm:$0xff]   ;;  %v855_v49 = vld [vmem:[#allocation7 + $0xf0] ss:$8 sps:$4 sm:$0xff]  }
  0x5b   :  { %v856_v50 = vld [vmem:[#allocation8 + $0x40] sm:$0xff]   ;;  %v858_v52 = vld [vmem:[#allocation8 + $0x48] sm:$0xff]   ;;  %v861_v55 = vld [vmem:[#allocation8 + $0x10] sm:$0xff]   ;;  %v101_v63 = vshrl.u32 %v100_v62, 7 }
  0x5c   :  { %199 = vmatpush1.bf16.msra.mxu0 %v798_v13  ;;  %446 = vmatpush1.bf16.msra.mxu1 %v819_v22  ;;  %v857_v51 = vld [vmem:[#allocation8] sm:$0xff]   ;;  %v859_v53 = vld [vmem:[#allocation8 + $0x8] sm:$0xff]   ;;  %v862_v56 = vld [vmem:[#allocation8 + $0x58] sm:$0xff]  }
  0x5d   :  { %200 = vmatprep.subr.bf16.mxu0 %v799_v16  ;;  %447 = vmatprep.subr.bf16.mxu1 %v820_v23  ;;  %v863_v57 = vld [vmem:[#allocation8 + $0x18] sm:$0xff]   ;;  %v864_v58 = vld [vmem:[#allocation8 + $0x60] sm:$0xff]   ;;  %v866_v60 = vld [vmem:[#allocation8 + $0x68] sm:$0xff]   ;;  %v102_v0 = vsub.s32 0, %v101_v63  ;;  %v106_v2 = vsub.s32 1, %v101_v63 }
  0x5e   :  { %v865_v59 = vld [vmem:[#allocation8 + $0x20] sm:$0xff]   ;;  %v867_v61 = vld [vmem:[#allocation8 + $0x28] sm:$0xff]   ;;  %v98_v1 = vld [vmem:[%s1121_s2] sm:$0x3] }
  0x5f   :  { %v103_v3 = vrot.slane %v98_v1, %v102_v0  ;;  %v107_v4 = vrot.slane %v98_v1, %v106_v2  ;;  %v868_v15 = vld [vmem:[#allocation8 + $0x70] sm:$0xff]   ;;  %v871_v18 = vld [vmem:[#allocation8 + $0x38] sm:$0xff]  }
  0x60   :  { %201 = vmatpush1.bf16.msra.mxu0 %v801_v17  ;;  %448 = vmatpush1.bf16.msra.mxu1 %v822_v26  ;;  %v869_v16 = vld [vmem:[#allocation8 + $0x30] sm:$0xff]   ;;  %v870_v17 = vld [vmem:[#allocation8 + $0x78] sm:$0xff]  }
  0x61   :  { %202 = vmatprep.subr.bf16.mxu0 %v802_v20  ;;  %449 = vmatprep.subr.bf16.mxu1 %v823_v27  ;;  %v267_v19 = vld [vmem:[%s1123_s4] sm:$0x3]  ;;  %s1003_s4 = smov [#allocation10]  }
  0x62   :  { %v272_v20 = vrot.slane %v267_v19, %v102_v0  ;;  %s676_s30 = sshll.u32 %s1003_s4, 4  ;;  %s677_s30 = int_to_ptr.vmem [resolvable:$true] %s676_s30 }
  0x63   :  { %p969_p5 = scmp.lt.s32.totalorder %s677_s30, %s677_s30 }
  0x64   :  { %203 = vmatpush1.bf16.msra.mxu0 %v804_v21  ;;  %450 = vmatpush1.bf16.msra.mxu1 %v825_v29  ;;  %v276_v21 = vrot.slane %v267_v19, %v106_v2 }
  0x65   :  { %204 = vmatprep.subr.bf16.mxu0 %v805_v24  ;;  %451 = vmatprep.subr.bf16.mxu1 %v826_v30 }
  0x68   :  { %205 = vmatpush1.bf16.msra.mxu0 %v807_v25  ;;  %452 = vmatpush1.bf16.msra.mxu1 %v828_v31 }
  0x69   :  { %453 = vmatprep.subr.bf16.mxu1 %v829_v32  ;;  %752 = vmatprep.subr.bf16.mxu0 %v856_v50 }
  0x6b   :  { %223 = vmatmul.mubr.bf16.vlgmr.msra.gmra.mrb[0].mxu0 %v81_v28 }
  0x6c   :  { %454 = vmatpush1.bf16.msra.mxu1 %v831_v33  ;;  %753 = vmatpush3.bf16.msra.mxu0 %v857_v51 }
  0x6d   :  { %455 = vmatprep.subr.bf16.mxu1 %v832_v34  ;;  %754 = vmatprep.subr.bf16.mxu0 %v858_v52  ;;  %v735_v34 = vld [vmem:[%s1125_s6] ss:$0 sm:$0xff]  ;;  %s964_s6 = scalar_lea.vmem %s677_s30, 64 }
  0x6e   :  { %p965_p4 = scmp.ne.s32.totalorder %s677_s30, %s964_s6  ;;  %p970_p6 = scmp.lt.s32.totalorder %s964_s6, %s964_s6 }
  0x70   :  { %456 = vmatpush1.bf16.msra.mxu1 %v834_v35  ;;  %755 = vmatpush3.bf16.msra.mxu0 %v859_v53  ;;  %p971_p7 = por %p970_p6, %p969_p5 }
  0x71   :  { %457 = vmatprep.subr.bf16.mxu1 %v835_v36  ;;  %756 = vmatprep.subr.bf16.mxu0 %v860_v54 }
  0x72   :  { %p972_p8 = pnand %p971_p7, %p965_p4 }
  0x74   :  { %458 = vmatpush1.bf16.msra.mxu1 %v837_v37  ;;  %757 = vmatpush3.bf16.msra.mxu0 %v861_v55 }
  0x75   :  { %459 = vmatprep.subr.bf16.mxu1 %v838_v38  ;;  %758 = vmatprep.subr.bf16.mxu0 %v862_v56 }
  0x78   :  { %460 = vmatpush1.bf16.msra.mxu1 %v840_v39  ;;  %759 = vmatpush3.bf16.msra.mxu0 %v863_v57 }
  0x79   :  { %461 = vmatprep.subr.bf16.mxu1 %v841_v40  ;;  %760 = vmatprep.subr.bf16.mxu0 %v864_v58 }
  0x7c   :  { %462 = vmatpush1.bf16.msra.mxu1 %v843_v41  ;;  %761 = vmatpush3.bf16.msra.mxu0 %v865_v59 }
  0x7d   :  { %463 = vmatprep.subr.bf16.mxu1 %v844_v42  ;;  %762 = vmatprep.subr.bf16.mxu0 %v866_v60 }
  0x80   :  { %464 = vmatpush1.bf16.msra.mxu1 %v846_v43  ;;  %763 = vmatpush3.bf16.msra.mxu0 %v867_v61 }
  0x81   :  { %465 = vmatprep.subr.bf16.mxu1 %v847_v44  ;;  %764 = vmatprep.subr.bf16.mxu0 %v868_v15 }
  0x84   :  { %466 = vmatpush1.bf16.msra.mxu1 %v849_v45  ;;  %765 = vmatpush3.bf16.msra.mxu0 %v869_v16 }
  0x85   :  { %467 = vmatprep.subr.bf16.mxu1 %v850_v46  ;;  %766 = vmatprep.subr.bf16.mxu0 %v870_v17 }
  0x88   :  { %468 = vmatpush1.bf16.msra.mxu1 %v852_v47  ;;  %767 = vmatpush3.bf16.msra.mxu0 %v871_v18 }
  0x89   :  { %469 = vmatprep.subr.bf16.mxu1 %v853_v48 }
  0x8c   :  { %470 = vmatpush1.bf16.msra.mxu1 %v855_v49 }
 0x13e   :  { %v224_v5 = vpop.f32.mrb[0].mxu0 }
 0x13f   :  { %v225_v6 = vadd.f32 %v224_v5, %v103_v3  ;;  %v226_v7 = vpop.f32.mrb[1].mxu0 }
 0x140   :  { %v227_v8 = vadd.f32 %v226_v7, %v107_v4  ;;  %v228_v9 = vpop.f32.mrb[2].mxu0 }
 0x141   :  { %v231_v10 = vmax.f32 %v225_v6, 0.0  ;;  %v229_v11 = vpop.f32.mrb[3].mxu0 }
 0x142   :  { %v232_v12 = vmax.f32 %v227_v8, 0.0 }
 0x143   :  { %v233_v14 = vpack.c.bf16 %v231_v10, %v231_v10 }
 0x144   :  { %v234_v13 = vpack.c.bf16 %v232_v12, %v232_v12 }
 0x146   :  { %471 = vmatprep.mubr.bf16.mxu1 %v234_v13 }
 0x147   :  { %472 = vmatmul.mubr.bf16.vlgmr.msra.gmra.mrb[0].mxu1 %v233_v14 }
 0x21a   :  { %v473_v22 = vpop.f32.mrb[0].mxu1 }
 0x21b   :  { %v474_v23 = vadd.f32 %v473_v22, %v272_v20  ;;  %v475_v24 = vpop.f32.mrb[1].mxu1 }
 0x21c   :  { %v476_v25 = vadd.f32 %v475_v24, %v276_v21  ;;  %v477_v26 = vpop.f32.mrb[2].mxu1 }
 0x21d   :  { %v480_v27 = vmax.f32 %v474_v23, 0.0  ;;  %v478_v28 = vpop.f32.mrb[3].mxu1 }
 0x21e   :  { %v481_v29 = vmax.f32 %v476_v25, 0.0 }
 0x21f   :  { %v482_v31 = vpack.c.bf16 %v480_v27, %v480_v27 }
 0x220   :  { %v483_v30 = vpack.c.bf16 %v481_v29, %v481_v29 }
 0x222   :  { %651 = vmatprep.mubr.bf16.mxu0 %v483_v30 }
 0x223   :  { %652 = vmatmul.mubr.bf16.vlgmr.msra.gmra.mrb[4].mxu0 %v482_v31 }
 0x2f6   :  { %v768_v32 = vpop.f32.mrb[4].mxu0 }
 0x2f7   :  { %v769_v33 = vpop.f32.mrb[5].mxu0 }
 0x2f8   :  { %v770_v35 = vadd.f32 %v769_v33, %v768_v32  ;;  %v771_v36 = vpop.f32.mrb[6].mxu0 }
 0x2f9   :  { %v772_v37 = vpop.f32.mrb[7].mxu0 }
 0x2fa   :  { %v654_v38 = vadd.f32 %v770_v35, %v735_v34 }
 0x2fc   :  { %659 = vmax.xlane.f32.xlu0 %v654_v38 }
 0x389   :  { %v660_v39 = vpop.xlane.xlu0 %659 }
 0x38a   :  { %v661_v40 = vsub.f32 %v654_v38, %v660_v39 }
 0x38c   :  { %v662_v41 = vmul.f32 1.442695, %v661_v40 }
 0x38e   :  { %872 = vpow2.f32 %v662_v41 }
 0x398   :  { %v873_v42 = vpop.eup %872 }
 0x399   :  { %664 = vadd.xlane.f32.xlu0 %v873_v42 }
 0x426   :  { %v665_v43 = vpop.xlane.xlu0 %664 }
 0x427   :  { %874 = vrcp.f32 %v665_v43 }
 0x431   :  { %v875_v44 = vpop.eup %874 }
 0x432   :  { %v667_v45 = vmul.f32 %v875_v44, %v873_v42 }
 0x434   :  { %v668_v46 = vpack.c.bf16 %v667_v45, %v667_v45 }
 0x436   :  { %669 = vst [vmem:[#allocation10] sm:$0xf] %v668_v46 }
 0x437   :  { %975 = shalt.err (!%p972_p8)
}
 0x438   :  { %s976_s10 = scalar_lea.hbm %s1126_s7, 64 }
 0x439   :  { %p977_p9 = scmp.ne.s32.totalorder %s1126_s7, %s976_s10  ;;  %p980_p10 = scmp.lt.u32.totalorder %s976_s10, %s1126_s7 }
 0x43b   :  { %p982_p11 = pnand %p980_p10, %p977_p9 }
 0x43d   :  { %985 = shalt.err (!%p982_p11)
}
 0x43e   :  { %679 = dma.vmem_to_hbm [thread:$0]  %s677_s30, 64, %s1126_s7, [#allocation4]  }
 0x43f   :  { %992 = dma.done.wait [#allocation4], 64  }
 0x440   :  { %993 = vsyncadd [#allocation4], 4294967232 }
 0x441   :  { %683 = vsyncpa [#allocation3], 1 }
 0x442   :  { %684 = vsyncpa [#allocation6], 1 }
 0x443   :  { %685 = vsyncpa [#allocation9], 1 }
 0x444   :  { %686 = vsyncpa [#allocation4], 1 }

</bundles_post_ra>
